<compile_context>
chip_gen: v5e
topology: v5e:2x2
jax: 0.10.0
libtpu: 0.0.40
codegen_flags: <defaults>
</compile_context>

<pallas_src>
import functools

import jax
import jax.numpy as jnp
from jax.experimental import pallas as pl
from jax.experimental.pallas import tpu as pltpu


def _out_conv1x1_kernel(x_ref, w_ref, b_ref, o_ref):
    # x_ref: (C_in, TILE)   w_ref: (C_out, C_in)   b_ref: (C_out, 1)
    # o_ref: (C_out, TILE)
    c_out, c_in = w_ref.shape
    x = x_ref[...]
    w = w_ref[...]
    if c_in <= 16 and c_out <= 16:
        # VPU path: C_in broadcast multiply-adds of (C_out, TILE); avoids
        # pushing K=C_in, N=C_out operands through a 128/256-wide MXU.
        acc = w[:, 0:1].astype(jnp.float32) * x[0:1, :].astype(jnp.float32)
        for ci in range(1, c_in):
            acc = acc + (
                w[:, ci:ci + 1].astype(jnp.float32)
                * x[ci:ci + 1, :].astype(jnp.float32)
            )
    else:
        # Large channel counts: MXU matmul with f32 accumulation.
        acc = jnp.dot(w, x, preferred_element_type=jnp.float32)
    o_ref[...] = (acc + b_ref[...].astype(jnp.float32)).astype(o_ref.dtype)


def _pick_tile_cols(hw, c_in, c_out, itemsize, max_tile_cols):
    """Largest legal lane-tile: multiple of 128, sized against VMEM.

    Budget ~8 MiB for the double-buffered input+output blocks so the kernel is
    safe even on v7x's smaller (64 MiB physical / 32 MiB scoped) VMEM while
    still being far above the ~0.35 us/step overhead regime.
    """
    if hw <= 128:
        return hw  # block last dim == full array dim -> always legal
    vmem_budget = 8 << 20
    per_col_bytes = 2 * (c_in + c_out) * itemsize  # 2 bufs each for in & out
    budget_cols = max(128, (vmem_budget // per_col_bytes) // 128 * 128)
    tile = min(max_tile_cols, budget_cols, (hw // 128) * 128)
    return max(tile, 128)


@functools.partial(jax.jit, static_argnames=("max_tile_cols",))
def out_forward(x_nchw, weight, bias, *, max_tile_cols=4096):
    """Equivalent of nn.Conv2d(C_in, C_out, kernel_size=1)(x).

    Args:
      x_nchw: (N, C_in, H, W)
      weight: (C_out, C_in, 1, 1)  (PyTorch conv weight layout)
      bias:   (C_out,)
    Returns:
      (N, C_out, H, W)
    """
    n, c_in, h, w = x_nchw.shape
    c_out = weight.shape[0]
    hw = h * w

    # Metadata-only reshapes (contiguous trailing dims) — no extra HBM pass.
    x = x_nchw.reshape(n, c_in, hw)
    w_mat = weight.reshape(c_out, c_in)
    b_col = bias.reshape(c_out, 1)

    tile_cols = _pick_tile_cols(hw, c_in, c_out, x.dtype.itemsize, max_tile_cols)
    grid = (n, pl.cdiv(hw, tile_cols))  # ragged last block handled by masking

    out = pl.pallas_call(
        _out_conv1x1_kernel,
        out_shape=jax.ShapeDtypeStruct((n, c_out, hw), x_nchw.dtype),
        grid_spec=pltpu.PrefetchScalarGridSpec(
            num_scalar_prefetch=0,
            grid=grid,
            in_specs=[
                # x: batch dim squeezed, spatial on lanes.
                pl.BlockSpec((None, c_in, tile_cols), lambda b, j: (b, 0, j)),
                # weight / bias: constant block index -> stays VMEM-resident.
                pl.BlockSpec((c_out, c_in), lambda b, j: (0, 0)),
                pl.BlockSpec((c_out, 1), lambda b, j: (0, 0)),
            ],
            out_specs=pl.BlockSpec(
                (None, c_out, tile_cols), lambda b, j: (b, 0, j)
            ),
        ),
        compiler_params=pltpu.CompilerParams(
            dimension_semantics=("parallel", "parallel"),
        ),
    )(x, w_mat, b_col)

    return out.reshape(n, c_out, h, w)


def _reference(x, weight, bias):
    c_out, c_in = weight.shape[0], weight.shape[1]
    return (
        jnp.einsum("nchw,oc->nohw", x, weight.reshape(c_out, c_in))
        + bias[None, :, None, None]
    )


if __name__ == "__main__":
    key = jax.random.PRNGKey(0)
    k_x, k_w, k_b, k_x2, k_w2, k_b2 = jax.random.split(key, 6)

    # Main test (shapes implied by the module: small batch / channels, 16x16).
    N, C_IN, C_OUT, H, W = 2, 4, 8, 16, 16
    x = jax.random.normal(k_x, (N, C_IN, H, W), dtype=jnp.float32)
    weight = jax.random.normal(k_w, (C_OUT, C_IN, 1, 1), dtype=jnp.float32) * 0.1
    bias = jax.random.normal(k_b, (C_OUT,), dtype=jnp.float32) * 0.1

    out = jax.block_until_ready(out_forward(x, weight, bias))
    ref = _reference(x, weight, bias)
    assert out.shape == (N, C_OUT, H, W)
    assert jnp.allclose(out, ref, atol=1e-5, rtol=1e-5)

    # Ragged-spatial test: H*W not a multiple of the tile -> exercises the
    # masked last block (out-of-bounds output columns dropped by Pallas).
    N2, C_IN2, C_OUT2, H2, W2 = 1, 3, 5, 18, 18
    x2 = jax.random.normal(k_x2, (N2, C_IN2, H2, W2), dtype=jnp.float32)
    weight2 = jax.random.normal(k_w2, (C_OUT2, C_IN2, 1, 1), dtype=jnp.float32) * 0.1
    bias2 = jax.random.normal(k_b2, (C_OUT2,), dtype=jnp.float32) * 0.1

    out2 = jax.block_until_ready(out_forward(x2, weight2, bias2))
    ref2 = _reference(x2, weight2, bias2)
    assert out2.shape == (N2, C_OUT2, H2, W2)
    assert jnp.allclose(out2, ref2, atol=1e-5, rtol=1e-5)

    print("KERNEL_OK")
</pallas_src>

<mosaic_0001>
module attributes {stable_mosaic.version = 11 : i64} {
  func.func @_out_conv1x1_kernel(%arg0: i32, %arg1: i32, %arg2: memref<1x4x256xf32, #tpu.memory_space<vmem>>, %arg3: memref<8x4xf32, #tpu.memory_space<vmem>>, %arg4: memref<8x1xf32, #tpu.memory_space<vmem>>, %arg5: memref<1x8x256xf32, #tpu.memory_space<vmem>>) attributes {dimension_semantics = [#tpu.dimension_semantics<parallel>, #tpu.dimension_semantics<parallel>], iteration_bounds = array<i64: 2, 1>, scalar_prefetch = 0 : i64, scratch_operands = 0 : i64, tpu.core_type = #tpu.core_type<tc>, window_params = [{transform_indices = @transform_0, window_bounds = array<i64: 1, 4, 256>}, {pipeline_mode = #tpu.pipeline_mode<synchronous>, transform_indices = @transform_1, window_bounds = array<i64: 8, 4>}, {pipeline_mode = #tpu.pipeline_mode<synchronous>, transform_indices = @transform_2, window_bounds = array<i64: 8, 1>}, {transform_indices = @transform_3, window_bounds = array<i64: 1, 8, 256>}]} {
    %c0 = arith.constant 0 : index
    %c0_0 = arith.constant 0 : index
    %c0_1 = arith.constant 0 : index
    %0 = vector.load %arg2[%c0, %c0_0, %c0_1] : memref<1x4x256xf32, #tpu.memory_space<vmem>>, vector<1x4x256xf32>
    %1 = vector.shape_cast %0 : vector<1x4x256xf32> to vector<4x256xf32>
    %c0_2 = arith.constant 0 : index
    %c0_3 = arith.constant 0 : index
    %2 = vector.load %arg3[%c0_2, %c0_3] : memref<8x4xf32, #tpu.memory_space<vmem>>, vector<8x4xf32>
    %3 = vector.extract_strided_slice %2 {offsets = [0, 0], sizes = [8, 1], strides = [1, 1]} : vector<8x4xf32> to vector<8x1xf32>
    %4 = vector.extract_strided_slice %1 {offsets = [0, 0], sizes = [1, 256], strides = [1, 1]} : vector<4x256xf32> to vector<1x256xf32>
    %5 = vector.broadcast %3 : vector<8x1xf32> to vector<8x256xf32>
    %6 = vector.broadcast %4 : vector<1x256xf32> to vector<8x256xf32>
    %7 = arith.mulf %5, %6 : vector<8x256xf32>
    %8 = vector.extract_strided_slice %2 {offsets = [0, 1], sizes = [8, 1], strides = [1, 1]} : vector<8x4xf32> to vector<8x1xf32>
    %9 = vector.extract_strided_slice %1 {offsets = [1, 0], sizes = [1, 256], strides = [1, 1]} : vector<4x256xf32> to vector<1x256xf32>
    %10 = vector.broadcast %8 : vector<8x1xf32> to vector<8x256xf32>
    %11 = vector.broadcast %9 : vector<1x256xf32> to vector<8x256xf32>
    %12 = arith.mulf %10, %11 : vector<8x256xf32>
    %13 = arith.addf %7, %12 : vector<8x256xf32>
    %14 = vector.extract_strided_slice %2 {offsets = [0, 2], sizes = [8, 1], strides = [1, 1]} : vector<8x4xf32> to vector<8x1xf32>
    %15 = vector.extract_strided_slice %1 {offsets = [2, 0], sizes = [1, 256], strides = [1, 1]} : vector<4x256xf32> to vector<1x256xf32>
    %16 = vector.broadcast %14 : vector<8x1xf32> to vector<8x256xf32>
    %17 = vector.broadcast %15 : vector<1x256xf32> to vector<8x256xf32>
    %18 = arith.mulf %16, %17 : vector<8x256xf32>
    %19 = arith.addf %13, %18 : vector<8x256xf32>
    %20 = vector.extract_strided_slice %2 {offsets = [0, 3], sizes = [8, 1], strides = [1, 1]} : vector<8x4xf32> to vector<8x1xf32>
    %21 = vector.extract_strided_slice %1 {offsets = [3, 0], sizes = [1, 256], strides = [1, 1]} : vector<4x256xf32> to vector<1x256xf32>
    %22 = vector.broadcast %20 : vector<8x1xf32> to vector<8x256xf32>
    %23 = vector.broadcast %21 : vector<1x256xf32> to vector<8x256xf32>
    %24 = arith.mulf %22, %23 : vector<8x256xf32>
    %25 = arith.addf %19, %24 : vector<8x256xf32>
    %c0_4 = arith.constant 0 : index
    %c0_5 = arith.constant 0 : index
    %26 = vector.load %arg4[%c0_4, %c0_5] : memref<8x1xf32, #tpu.memory_space<vmem>>, vector<8x1xf32>
    %27 = vector.broadcast %26 : vector<8x1xf32> to vector<8x256xf32>
    %28 = arith.addf %25, %27 : vector<8x256xf32>
    %c0_6 = arith.constant 0 : index
    %c0_7 = arith.constant 0 : index
    %c0_8 = arith.constant 0 : index
    %29 = vector.load %arg5[%c0_6, %c0_7, %c0_8] : memref<1x8x256xf32, #tpu.memory_space<vmem>>, vector<1x8x256xf32>
    %30 = vector.shape_cast %29 : vector<1x8x256xf32> to vector<8x256xf32>
    %31 = vector.shape_cast %28 : vector<8x256xf32> to vector<1x8x256xf32>
    tpu.vector_store %arg5[%c0_6, %c0_7, %c0_8], %31 {strides = array<i32>} : memref<1x8x256xf32, #tpu.memory_space<vmem>>, vector<1x8x256xf32>,
    return
  }
  func.func @transform_0(%arg0: i32, %arg1: i32) -> (i32, i32, i32) {
    %c0_i32 = arith.constant 0 : i32
    %c0_i32_0 = arith.constant 0 : i32
    return %arg0, %c0_i32, %arg1 : i32, i32, i32
  }
  func.func @transform_1(%arg0: i32, %arg1: i32) -> (i32, i32) {
    %c0_i32 = arith.constant 0 : i32
    %c0_i32_0 = arith.constant 0 : i32
    %c0_i32_1 = arith.constant 0 : i32
    return %c0_i32, %c0_i32_0 : i32, i32
  }
  func.func @transform_2(%arg0: i32, %arg1: i32) -> (i32, i32) {
    %c0_i32 = arith.constant 0 : i32
    %c0_i32_0 = arith.constant 0 : i32
    %c0_i32_1 = arith.constant 0 : i32
    return %c0_i32, %c0_i32_0 : i32, i32
  }
  func.func @transform_3(%arg0: i32, %arg1: i32) -> (i32, i32, i32) {
    %c0_i32 = arith.constant 0 : i32
    %c0_i32_0 = arith.constant 0 : i32
    return %arg0, %c0_i32, %arg1 : i32, i32, i32
  }
}

</mosaic_0001>

<bundles_post_ra>
// kernel: out_forward.1
= control target key start
LH: loop header
LB: loop body
LE: loop exit
PB: predicated region body
PF: predicated region fallthrough
CT: control target
= control target key end

     0   :  { %s460_s12 = smov 0   ;;  %s462_s13 = smov 0   ;;  %s503_s0 = inlined_call_operand.vmem [shape: f32[2,4,256], index: 0, kind: input, shape index: {}]   ;;  %s504_s1 = inlined_call_operand.vmem [shape: f32[8,4], index: 1, kind: input, shape index: {}]   ;;  %s505_s2 = inlined_call_operand.vmem [shape: f32[8,1], index: 2, kind: input, shape index: {}]   ;;  %s506_s3 = inlined_call_operand.vmem [shape: f32[2,8,256], index: 3, kind: output, shape index: {}]  }
   0x1   :  { %s464_s14 = smov 0  }
   0x2 LB: > { %s25_s15 = sadd.s32 1, %s430_s13  ;;  %p369_p0 = scmp.ge.s32.totalorder %s434_s14, 1  ;;  %s434_s14 = sphi %s464_s14, %s13_s14   ;;  %s430_s13 = sphi %s462_s13, %s508_s13   ;;  %s426_s12 = sphi %s460_s12, %s507_s12  }
   0x3   : > { %p27_p1 = scmp.ge.s32.totalorder %s25_s15, 2  ;;  %p158_p2 = scmp.lt.s32.totalorder %s434_s14, 3 }
   0x5   : > { %s510_s15 = smov (%p27_p1, %s25_s15), 0  ;;  %p159_p3 = pnand %p369_p0, %p158_p2 }
   0x6   : > { %p191_p4 = scmp.lt.s32.totalorder (!%p159_p3), %s426_s12, 1 }
   0x7   : > { %162 = sbr.rel (%p159_p3) target bundleno = 150 (0x96), region = 32 }
   0xc   : > { %v211_v0 = vld [vmem:[%s504_s1] sm:$0xff]  ;;  %v436_v1 = vmov 0   ;;  %v437_v2 = vmov 2   ;;  %v438_v4 = vmov 1   ;;  %v439_v5 = vmov 3   ;;  %s512_s12 = smov (!%p191_p4, %s426_s12), 1 }
   0xd   : > { %406 = vset.pattern.permute.xlu0 %v436_v1  ;;  %408 = vset.pattern.permute.xlu1 %v437_v2  ;;  %v268_v3 = vld [vmem:[%s505_s2] sm:$0xff]  ;;  %s376_s20 = sshll.u32 %s512_s12, 3  ;;  %s377_s24 = sshll.u32 %s512_s12, 4 }
   0xe   : > { %214 = vperm.xlu0 %406, %v211_v0   ;;  %241 = vperm.xlu1 %408, %v211_v0   ;;  %s198_s23 = scalar_lea.vmem %s503_s0, %s376_s20  ;;  %s208_s27 = scalar_lea.vmem %s506_s3, %s377_s24 }
   0xf   : > { %410 = vset.pattern.permute.xlu2 %v436_v1  ;;  %v210_v6 = vld [vmem:[%s198_s23] sm:$0xff] }
  0x10   : > { %271 = vperm.xlu2 %410, %v268_v3   ;;  %v218_v9 = vperm.slane %v210_v6, 0  ;;  %v219_v10 = vperm.slane %v210_v6, 4  ;;  %v230_v11 = vperm.slane %v210_v6, 1  ;;  %v231_v12 = vperm.slane %v210_v6, 5 }
  0x11   : > { %v244_v13 = vperm.slane %v210_v6, 2  ;;  %v245_v14 = vperm.slane %v210_v6, 6  ;;  %v258_v15 = vperm.slane %v210_v6, 3  ;;  %v259_v16 = vperm.slane %v210_v6, 7 }
  0x12   : > { %v222_v17 = vperm.slane %v218_v9, 0  ;;  %v223_v18 = vperm.slane %v219_v10, 0  ;;  %v234_v19 = vperm.slane %v230_v11, 1  ;;  %v235_v20 = vperm.slane %v231_v12, 1 }
  0x13   : > { %v248_v21 = vperm.slane %v244_v13, 2  ;;  %v249_v22 = vperm.slane %v245_v14, 2  ;;  %v262_v23 = vperm.slane %v258_v15, 3  ;;  %v263_v24 = vperm.slane %v259_v16, 3 }
  0x16   : > { %407 = vset.pattern.permute.xlu0 %v438_v4  ;;  %409 = vset.pattern.permute.xlu1 %v439_v5 }
  0x17   : > { %227 = vperm.xlu0 %407, %v211_v0   ;;  %255 = vperm.xlu1 %409, %v211_v0  }
  0x1f   : > { %411 = vset.pattern.permute.xlu0 %v436_v1 }
  0x6a   : > { %v272_v39 = vpop.permute.xlu2 %271 }
  0x80   : > { %v215_v7 = vpop.permute.xlu0 %214  ;;  %v242_v8 = vpop.permute.xlu1 %241 }
  0x81   : > { %v224_v27 = vmul.f32 %v222_v17, %v215_v7  ;;  %v225_v28 = vmul.f32 %v223_v18, %v215_v7  ;;  %v250_v31 = vmul.f32 %v248_v21, %v242_v8  ;;  %v251_v32 = vmul.f32 %v249_v22, %v242_v8 }
  0x89   : > { %v228_v25 = vpop.permute.xlu0 %227  ;;  %v256_v26 = vpop.permute.xlu1 %255 }
  0x8a   : > { %v236_v29 = vmul.f32 %v234_v19, %v228_v25  ;;  %v237_v30 = vmul.f32 %v235_v20, %v228_v25  ;;  %v264_v35 = vmul.f32 %v262_v23, %v256_v26  ;;  %v265_v36 = vmul.f32 %v263_v24, %v256_v26 }
  0x8c   : > { %v238_v33 = vadd.f32 %v236_v29, %v224_v27  ;;  %v239_v34 = vadd.f32 %v237_v30, %v225_v28 }
  0x8e   : > { %v252_v37 = vadd.f32 %v250_v31, %v238_v33  ;;  %v253_v38 = vadd.f32 %v251_v32, %v239_v34 }
  0x90   : > { %v266_v40 = vadd.f32 %v264_v35, %v252_v37  ;;  %v267_v41 = vadd.f32 %v265_v36, %v253_v38 }
  0x92   : > { %v274_v42 = vadd.f32 %v272_v39, %v266_v40  ;;  %v275_v43 = vadd.f32 %v272_v39, %v267_v41 }
  0x94   : > { %276 = vst [vmem:[%s208_s27] sm:$0xff] %v274_v42 }
  0x95   : > { %277 = vst [vmem:[%s208_s27 + $0x8] sm:$0xff] %v275_v43 }
  0x96 PF: > { %s13_s14 = sadd.s32 1, %s434_s14   ;;  %s507_s12 = smov %s430_s13 }
  0x97   : > { %p10_p5 = scmp.ge.s32.totalorder %s13_s14, 4   ;;  %s508_s13 = smov %s510_s15 }
  0x99   :  { %12 = sbr.rel (!%p10_p5) target bundleno = 2 (0x2), region = 62 }

</bundles_post_ra>
